<compile_context>
chip_gen: v7x
topology: tpu7x:2x2x1
jax: 0.10.0
libtpu: 0.0.40
codegen_flags: <defaults>
</compile_context>

<pallas_src>
import jax
import jax.numpy as jnp
from jax.experimental import pallas as pl
from jax.experimental.pallas import tpu as pltpu


def _attn_kernel(h_ref, f_ref, whw_ref, whb_ref, wcw_ref, wcb_ref,
                 vw_ref, vb_ref, o_ref):
    # Per-grid-step shapes (TB = batch tile):
    #   h_ref   : (TB, H)      hidden (size-1 middle dim squeezed away)
    #   f_ref   : (TB, L, H)   cnn features
    #   whw_ref : (H, H)       wh weight, pre-transposed to (in, out)
    #   whb_ref : (1, H)
    #   wcw_ref : (H, H)       wc weight, pre-transposed to (in, out)
    #   wcb_ref : (1, H)
    #   vw_ref  : (1, H)       v weight row
    #   vb_ref  : (1, 1)       v bias
    #   o_ref   : (TB, L)      softmax(scores) over L, lane-dense output block
    tb, l, h = f_ref.shape

    # One tall MXU matmul for the wc projection: (TB*L, H) @ (H, H), f32 accumulation.
    f2 = f_ref[...].reshape(tb * l, h)
    cp = jnp.dot(f2, wcw_ref[...], preferred_element_type=jnp.float32) + wcb_ref[...]
    # Hidden projection for all TB rows at once: (TB, H) @ (H, H).
    hp = jnp.dot(h_ref[...], whw_ref[...], preferred_element_type=jnp.float32) + whb_ref[...]

    # tanh(wc(feats) + wh(hidden)); hp broadcast over the L positions.
    e = jnp.tanh(cp.reshape(tb, l, h) + hp[:, None, :])           # (TB, L, H)

    # v projection: lane reduction over H -> scores laid out lane-dense over L.
    s = jnp.sum(e * vw_ref[...], axis=-1) + vb_ref[...]           # (TB, L)

    # Numerically stable softmax over L (the lane axis).
    m = jnp.max(s, axis=-1, keepdims=True)
    p = jnp.exp(s - m)
    denom = jnp.sum(p, axis=-1, keepdims=True)
    o_ref[...] = (p * pl.reciprocal(denom, approx=False)).astype(o_ref.dtype)


def prepare_params(params):
    """One-time layout plumbing: (out,in)->(in,out) weight transposes, 2-D biases."""
    h = params["wh_w"].shape[0]
    return {
        "wh_w_t": jnp.asarray(params["wh_w"]).T,
        "wc_w_t": jnp.asarray(params["wc_w"]).T,
        "wh_b": jnp.asarray(params["wh_b"]).reshape(1, h),
        "wc_b": jnp.asarray(params["wc_b"]).reshape(1, h),
        "v_w": jnp.asarray(params["v_w"]).reshape(1, h),
        "v_b": jnp.asarray(params["v_b"]).reshape(1, 1),
    }


def _pick_block_b(B, L, H, vmem_budget_bytes=24 << 20):
    """Batch tile size.

    Small batches: one fat grid step (no per-step overhead; optimal on v5e/v6e).
    Large batches: ~half the batch per step, rounded to a multiple of 8 (sublane
    aligned blocks), giving >=2 'parallel' steps for v7x's two TensorCores, and
    shrunk until the double-buffered activations fit a conservative VMEM budget.
    """
    if B <= 8:
        return B
    tb = ((B + 1) // 2 + 7) // 8 * 8
    per_row_bytes = (L * H + H + L) * 4          # cnn + hidden + out blocks per row, f32
    while tb > 8 and 2 * tb * per_row_bytes > vmem_budget_bytes:  # x2: double-buffering
        tb = max(8, (tb // 2 + 7) // 8 * 8)
    return min(tb, B)


def attn_forward(hidden, cnn_feats, prepared, block_b=None):
    """hidden: (B, 1, H); cnn_feats: (B, L, H) -> energy: (B, L, 1)."""
    B, one, H = hidden.shape
    assert one == 1
    _, L, H2 = cnn_feats.shape
    assert H2 == H
    if block_b is None:
        block_b = _pick_block_b(B, L, H)

    weight_res = lambda b: (0, 0)     # grid-invariant -> weight blocks stay VMEM-resident
    energy = pl.pallas_call(
        _attn_kernel,
        out_shape=jax.ShapeDtypeStruct((B, L), cnn_feats.dtype),
        grid=(pl.cdiv(B, block_b),),
        in_specs=[
            pl.BlockSpec((block_b, pl.Squeezed(), H), lambda b: (b, 0, 0)),  # hidden
            pl.BlockSpec((block_b, L, H), lambda b: (b, 0, 0)),              # cnn_feats
            pl.BlockSpec((H, H), weight_res),                                # wh_w^T
            pl.BlockSpec((1, H), weight_res),                                # wh_b
            pl.BlockSpec((H, H), weight_res),                                # wc_w^T
            pl.BlockSpec((1, H), weight_res),                                # wc_b
            pl.BlockSpec((1, H), weight_res),                                # v_w
            pl.BlockSpec((1, 1), weight_res),                                # v_b
        ],
        out_specs=pl.BlockSpec((block_b, L), lambda b: (b, 0)),
        compiler_params=pltpu.CompilerParams(
            dimension_semantics=("parallel",),
        ),
    )(hidden, cnn_feats,
      prepared["wh_w_t"], prepared["wh_b"],
      prepared["wc_w_t"], prepared["wc_b"],
      prepared["v_w"], prepared["v_b"])

    # Match the PyTorch output shape [B, L, 1]; kernel output is kept lane-dense (B, L).
    return energy[..., None]


def attn_reference(hidden, cnn_feats, params):
    """Pure-JAX reference mirroring the PyTorch forward."""
    hp = hidden @ params["wh_w"].T + params["wh_b"]          # (B, 1, H)
    cp = cnn_feats @ params["wc_w"].T + params["wc_b"]       # (B, L, H)
    e = jnp.tanh(hp + cp)
    s = e @ params["v_w"].T + params["v_b"]                  # (B, L, 1)
    return jax.nn.softmax(s, axis=1)


def init_params(key, hidden_size):
    """Deterministic synthetic init (matches nn.Linear's uniform(-1/sqrt(H), 1/sqrt(H)))."""
    ks = jax.random.split(key, 6)
    bound = 1.0 / float(jnp.sqrt(jnp.float32(hidden_size)))
    return {
        "wh_w": jax.random.uniform(ks[0], (hidden_size, hidden_size), jnp.float32, -bound, bound),
        "wh_b": jax.random.uniform(ks[1], (hidden_size,), jnp.float32, -bound, bound),
        "wc_w": jax.random.uniform(ks[2], (hidden_size, hidden_size), jnp.float32, -bound, bound),
        "wc_b": jax.random.uniform(ks[3], (hidden_size,), jnp.float32, -bound, bound),
        "v_w": jax.random.uniform(ks[4], (1, hidden_size), jnp.float32, -bound, bound),
        "v_b": jax.random.uniform(ks[5], (1,), jnp.float32, -bound, bound),
    }


if __name__ == "__main__":
    key = jax.random.PRNGKey(0)
    kp, kh, kf = jax.random.split(key, 3)

    # Small shapes consistent with the module: batch=2, cnn-feature length=8, hidden=32.
    B, L, H = 2, 8, 32
    params = init_params(kp, H)
    prepared = prepare_params(params)    # one-time transposes/reshapes, not per call
    hidden = jax.random.normal(kh, (B, 1, H), jnp.float32)
    cnn_feats = jax.random.normal(kf, (B, L, H), jnp.float32)

    fwd = jax.jit(attn_forward)
    energy = jax.block_until_ready(fwd(hidden, cnn_feats, prepared))

    assert energy.shape == (B, L, 1), energy.shape
    ref = attn_reference(hidden, cnn_feats, params)
    max_err = float(jnp.max(jnp.abs(energy - ref)))
    assert jnp.allclose(energy, ref, rtol=1e-4, atol=1e-5), f"mismatch, max_err={max_err}"
    # Attention weights must sum to 1 over the L axis.
    assert jnp.allclose(jnp.sum(energy, axis=1), 1.0, atol=1e-5)
    assert bool(jnp.all(jnp.isfinite(energy)))
    print("KERNEL_OK")
</pallas_src>

<mosaic_0001>
module attributes {stable_mosaic.version = 11 : i64} {
  func.func @_attn_kernel(%arg0: i32, %arg1: memref<2x1x32xf32, #tpu.memory_space<vmem>>, %arg2: memref<2x8x32xf32, #tpu.memory_space<vmem>>, %arg3: memref<32x32xf32, #tpu.memory_space<vmem>>, %arg4: memref<1x32xf32, #tpu.memory_space<vmem>>, %arg5: memref<32x32xf32, #tpu.memory_space<vmem>>, %arg6: memref<1x32xf32, #tpu.memory_space<vmem>>, %arg7: memref<1x32xf32, #tpu.memory_space<vmem>>, %arg8: memref<1x1xf32, #tpu.memory_space<vmem>>, %arg9: memref<2x8xf32, #tpu.memory_space<vmem>>) attributes {dimension_semantics = [#tpu.dimension_semantics<parallel>], iteration_bounds = array<i64: 1>, scalar_prefetch = 0 : i64, scratch_operands = 0 : i64, tpu.core_type = #tpu.core_type<tc>, window_params = [{transform_indices = @transform_0, window_bounds = array<i64: 2, 1, 32>}, {transform_indices = @transform_1, window_bounds = array<i64: 2, 8, 32>}, {pipeline_mode = #tpu.pipeline_mode<synchronous>, transform_indices = @transform_2, window_bounds = array<i64: 32, 32>}, {pipeline_mode = #tpu.pipeline_mode<synchronous>, transform_indices = @transform_3, window_bounds = array<i64: 1, 32>}, {pipeline_mode = #tpu.pipeline_mode<synchronous>, transform_indices = @transform_4, window_bounds = array<i64: 32, 32>}, {pipeline_mode = #tpu.pipeline_mode<synchronous>, transform_indices = @transform_5, window_bounds = array<i64: 1, 32>}, {pipeline_mode = #tpu.pipeline_mode<synchronous>, transform_indices = @transform_6, window_bounds = array<i64: 1, 32>}, {pipeline_mode = #tpu.pipeline_mode<synchronous>, transform_indices = @transform_7, window_bounds = array<i64: 1, 1>}, {transform_indices = @transform_8, window_bounds = array<i64: 2, 8>}]} {
    %c0 = arith.constant 0 : index
    %c0_0 = arith.constant 0 : index
    %c0_1 = arith.constant 0 : index
    %0 = vector.load %arg2[%c0, %c0_0, %c0_1] : memref<2x8x32xf32, #tpu.memory_space<vmem>>, vector<2x8x32xf32>
    %1 = vector.shape_cast %0 : vector<2x8x32xf32> to vector<16x32xf32>
    %c0_2 = arith.constant 0 : index
    %c0_3 = arith.constant 0 : index
    %2 = vector.load %arg5[%c0_2, %c0_3] : memref<32x32xf32, #tpu.memory_space<vmem>>, vector<32x32xf32>
    %cst = arith.constant dense<0.000000e+00> : vector<16x32xf32>
    %3 = tpu.matmul %1, %2, %cst {dimension_numbers = #tpu.dot_dimension_numbers<[1], [0], [0], [1], [0, 0, 1, 1], [], []>} : vector<16x32xf32>, vector<32x32xf32>, vector<16x32xf32> -> vector<16x32xf32>
    %c0_4 = arith.constant 0 : index
    %c0_5 = arith.constant 0 : index
    %4 = vector.load %arg6[%c0_4, %c0_5] : memref<1x32xf32, #tpu.memory_space<vmem>>, vector<1x32xf32>
    %5 = vector.broadcast %4 : vector<1x32xf32> to vector<16x32xf32>
    %6 = arith.addf %3, %5 : vector<16x32xf32>
    %c0_6 = arith.constant 0 : index
    %c0_7 = arith.constant 0 : index
    %c0_8 = arith.constant 0 : index
    %7 = vector.load %arg1[%c0_6, %c0_7, %c0_8] : memref<2x1x32xf32, #tpu.memory_space<vmem>>, vector<2x1x32xf32>
    %8 = vector.shape_cast %7 : vector<2x1x32xf32> to vector<2x32xf32>
    %c0_9 = arith.constant 0 : index
    %c0_10 = arith.constant 0 : index
    %9 = vector.load %arg3[%c0_9, %c0_10] : memref<32x32xf32, #tpu.memory_space<vmem>>, vector<32x32xf32>
    %cst_11 = arith.constant dense<0.000000e+00> : vector<2x32xf32>
    %10 = tpu.matmul %8, %9, %cst_11 {dimension_numbers = #tpu.dot_dimension_numbers<[1], [0], [0], [1], [0, 0, 1, 1], [], []>} : vector<2x32xf32>, vector<32x32xf32>, vector<2x32xf32> -> vector<2x32xf32>
    %c0_12 = arith.constant 0 : index
    %c0_13 = arith.constant 0 : index
    %11 = vector.load %arg4[%c0_12, %c0_13] : memref<1x32xf32, #tpu.memory_space<vmem>>, vector<1x32xf32>
    %12 = vector.broadcast %11 : vector<1x32xf32> to vector<2x32xf32>
    %13 = arith.addf %10, %12 : vector<2x32xf32>
    %14 = vector.shape_cast %6 : vector<16x32xf32> to vector<2x8x32xf32>
    %15 = vector.shape_cast %13 : vector<2x32xf32> to vector<2x1x32xf32>
    %16 = vector.broadcast %15 : vector<2x1x32xf32> to vector<2x8x32xf32>
    %17 = arith.addf %14, %16 : vector<2x8x32xf32>
    %18 = math.tanh %17 : vector<2x8x32xf32>
    %c0_14 = arith.constant 0 : index
    %c0_15 = arith.constant 0 : index
    %19 = vector.load %arg7[%c0_14, %c0_15] : memref<1x32xf32, #tpu.memory_space<vmem>>, vector<1x32xf32>
    %20 = vector.shape_cast %19 : vector<1x32xf32> to vector<1x1x32xf32>
    %21 = vector.broadcast %20 : vector<1x1x32xf32> to vector<2x8x32xf32>
    %22 = arith.mulf %18, %21 : vector<2x8x32xf32>
    %cst_16 = arith.constant dense<0.000000e+00> : vector<2x8xf32>
    %23 = vector.multi_reduction <add>, %22, %cst_16 [2] : vector<2x8x32xf32> to vector<2x8xf32>
    %c0_17 = arith.constant 0 : index
    %c0_18 = arith.constant 0 : index
    %24 = vector.load %arg8[%c0_17, %c0_18] : memref<1x1xf32, #tpu.memory_space<vmem>>, vector<1x1xf32>
    %25 = vector.broadcast %24 : vector<1x1xf32> to vector<2x8xf32>
    %26 = arith.addf %23, %25 : vector<2x8xf32>
    %cst_19 = arith.constant dense<0xFF800000> : vector<2xf32>
    %27 = vector.multi_reduction <maximumf>, %26, %cst_19 [1] : vector<2x8xf32> to vector<2xf32>
    %28 = vector.shape_cast %27 : vector<2xf32> to vector<2x1xf32>
    %29 = vector.broadcast %28 : vector<2x1xf32> to vector<2x8xf32>
    %30 = arith.subf %26, %29 : vector<2x8xf32>
    %31 = math.exp %30 : vector<2x8xf32>
    %cst_20 = arith.constant dense<0.000000e+00> : vector<2xf32>
    %32 = vector.multi_reduction <add>, %31, %cst_20 [1] : vector<2x8xf32> to vector<2xf32>
    %33 = vector.shape_cast %32 : vector<2xf32> to vector<2x1xf32>
    %34 = tpu.reciprocal %33 : vector<2x1xf32> -> vector<2x1xf32>
    %35 = vector.broadcast %34 : vector<2x1xf32> to vector<2x8xf32>
    %36 = arith.mulf %31, %35 : vector<2x8xf32>
    %c0_21 = arith.constant 0 : index
    %c0_22 = arith.constant 0 : index
    %37 = vector.load %arg9[%c0_21, %c0_22] : memref<2x8xf32, #tpu.memory_space<vmem>>, vector<2x8xf32>
    tpu.vector_store %arg9[%c0_21, %c0_22], %36 {strides = array<i32>} : memref<2x8xf32, #tpu.memory_space<vmem>>, vector<2x8xf32>,
    return
  }
  func.func @transform_0(%arg0: i32) -> (i32, i32, i32) {
    %c0_i32 = arith.constant 0 : i32
    %c0_i32_0 = arith.constant 0 : i32
    %c0_i32_1 = arith.constant 0 : i32
    return %arg0, %c0_i32, %c0_i32_0 : i32, i32, i32
  }
  func.func @transform_1(%arg0: i32) -> (i32, i32, i32) {
    %c0_i32 = arith.constant 0 : i32
    %c0_i32_0 = arith.constant 0 : i32
    %c0_i32_1 = arith.constant 0 : i32
    return %arg0, %c0_i32, %c0_i32_0 : i32, i32, i32
  }
  func.func @transform_2(%arg0: i32) -> (i32, i32) {
    %c0_i32 = arith.constant 0 : i32
    %c0_i32_0 = arith.constant 0 : i32
    %c0_i32_1 = arith.constant 0 : i32
    return %c0_i32, %c0_i32_0 : i32, i32
  }
  func.func @transform_3(%arg0: i32) -> (i32, i32) {
    %c0_i32 = arith.constant 0 : i32
    %c0_i32_0 = arith.constant 0 : i32
    %c0_i32_1 = arith.constant 0 : i32
    return %c0_i32, %c0_i32_0 : i32, i32
  }
  func.func @transform_4(%arg0: i32) -> (i32, i32) {
    %c0_i32 = arith.constant 0 : i32
    %c0_i32_0 = arith.constant 0 : i32
    %c0_i32_1 = arith.constant 0 : i32
    return %c0_i32, %c0_i32_0 : i32, i32
  }
  func.func @transform_5(%arg0: i32) -> (i32, i32) {
    %c0_i32 = arith.constant 0 : i32
    %c0_i32_0 = arith.constant 0 : i32
    %c0_i32_1 = arith.constant 0 : i32
    return %c0_i32, %c0_i32_0 : i32, i32
  }
  func.func @transform_6(%arg0: i32) -> (i32, i32) {
    %c0_i32 = arith.constant 0 : i32
    %c0_i32_0 = arith.constant 0 : i32
    %c0_i32_1 = arith.constant 0 : i32
    return %c0_i32, %c0_i32_0 : i32, i32
  }
  func.func @transform_7(%arg0: i32) -> (i32, i32) {
    %c0_i32 = arith.constant 0 : i32
    %c0_i32_0 = arith.constant 0 : i32
    %c0_i32_1 = arith.constant 0 : i32
    return %c0_i32, %c0_i32_0 : i32, i32
  }
  func.func @transform_8(%arg0: i32) -> (i32, i32) {
    %c0_i32 = arith.constant 0 : i32
    %c0_i32_0 = arith.constant 0 : i32
    return %arg0, %c0_i32 : i32, i32
  }
}

</mosaic_0001>

<bundles_post_ra>
// kernel: attn_forward.1
= control target key start
LH: loop header
LB: loop body
LE: loop exit
PB: predicated region body
PF: predicated region fallthrough
CT: control target
= control target key end

     0   :  { %s768_s0 = inlined_call_operand.vmem [shape: f32[2,1,32], index: 0, kind: input, shape index: {}]   ;;  %s769_s1 = inlined_call_operand.hbm [shape: f32[2,8,32], index: 1, kind: input, shape index: {}]   ;;  %s770_s2 = inlined_call_operand.hbm [shape: f32[32,32], index: 2, kind: input, shape index: {}]   ;;  %s771_s3 = inlined_call_operand.vmem [shape: f32[1,32], index: 3, kind: input, shape index: {}]   ;;  %s772_s4 = inlined_call_operand.hbm [shape: f32[32,32], index: 4, kind: input, shape index: {}]   ;;  %s773_s5 = inlined_call_operand.vmem [shape: f32[1,32], index: 5, kind: input, shape index: {}]   ;;  %s774_s6 = inlined_call_operand.vmem [shape: f32[1,32], index: 6, kind: input, shape index: {}]   ;;  %s775_s7 = inlined_call_operand.<no memory space> [shape: f32[1,1], index: 7, kind: input, shape index: {}]   ;;  %s776_s8 = inlined_call_operand.hbm [shape: f32[2,8], index: 8, kind: output, shape index: {}]  }
   0x1   :  { %v13_v0 = vstv %s775_s7 }
   0x2   :  { %14 = vst [vmem:[#allocation2] sm:$0x1] %v13_v0 }
   0x3   :  { %15 = vsyncpa [#allocation4], 0 }
   0x4   :  { %16 = vsyncpa [#allocation7], 0 }
   0x5   :  { %17 = vsyncpa [#allocation5], 0  ;;  %s611_s29 = smov [#allocation6]   ;;  %s612_s9 = smov [#allocation3]  }
   0x6   :  { %s37_s30 = sshll.u32 %s611_s29, 4  ;;  %s25_s10 = sshll.u32 %s612_s9, 4  ;;  %s38_s30 = int_to_ptr.vmem [resolvable:$true] %s37_s30  ;;  %s670_s10 = int_to_ptr.vmem [resolvable:$true] %s25_s10 }
   0x7   :  { %s517_s13 = scalar_lea.hbm %s770_s2, 512 }
   0x8   :  { %p518_p0 = scmp.ne.s32.totalorder %s770_s2, %s517_s13  ;;  %p521_p1 = scmp.lt.u32.totalorder %s517_s13, %s770_s2 }
   0xa   :  { %p523_p2 = pnand %p521_p1, %p518_p0 }
   0xc   :  { %526 = shalt.err (!%p523_p2)
}
   0xd   :  { %s527_s17 = scalar_lea.vmem %s38_s30, 512  ;;  %p532_p4 = scmp.lt.s32.totalorder %s38_s30, %s38_s30 }
   0xe   :  { %p528_p3 = scmp.ne.s32.totalorder %s38_s30, %s527_s17  ;;  %p533_p5 = scmp.lt.s32.totalorder %s527_s17, %s527_s17 }
  0x10   :  { %p534_p6 = por %p533_p5, %p532_p4 }
  0x12   :  { %p535_p7 = pnand %p534_p6, %p528_p3 }
  0x14   :  { %538 = shalt.err (!%p535_p7)
}
  0x15   :  { %s613_s18 = smov 128   ;;  %s614_s19 = smov 8  }
  0x16   :  { %43 = dma.hbm_to_vmem [thread:$0]  %s770_s2, 512, %s38_s30, [#allocation7], %s613_s18, %s613_s18, %s614_s19  }
  0x17   :  { %s539_s24 = scalar_lea.hbm %s769_s1, 256 }
  0x18   :  { %p540_p8 = scmp.ne.s32.totalorder %s769_s1, %s539_s24  ;;  %p543_p9 = scmp.lt.u32.totalorder %s539_s24, %s769_s1 }
  0x1a   :  { %p545_p10 = pnand %p543_p9, %p540_p8 }
  0x1c   :  { %548 = shalt.err (!%p545_p10)
}
  0x1d   :  { %s549_s29 = scalar_lea.vmem %s670_s10, 256  ;;  %p554_p12 = scmp.lt.s32.totalorder %s670_s10, %s670_s10 }
  0x1e   :  { %p550_p11 = scmp.ne.s32.totalorder %s670_s10, %s549_s29  ;;  %p555_p13 = scmp.lt.s32.totalorder %s549_s29, %s549_s29 }
  0x20   :  { %p556_p0 = por %p555_p13, %p554_p12 }
  0x22   :  { %p557_p1 = pnand %p556_p0, %p550_p11 }
  0x24   :  { %560 = shalt.err (!%p557_p1)
}
  0x25   :  { %31 = dma.hbm_to_vmem [thread:$0]  %s769_s1, 256, %s670_s10, [#allocation4], %s613_s18, %s613_s18, %s614_s19  }
  0x26   :  { %s615_s9 = smov [#allocation8]   ;;  %s561_s14 = scalar_lea.hbm %s772_s4, 512 }
  0x27   :  { %s51_s11 = sshll.u32 %s615_s9, 4  ;;  %p562_p2 = scmp.ne.s32.totalorder %s772_s4, %s561_s14  ;;  %s52_s11 = int_to_ptr.vmem [resolvable:$true] %s51_s11 }
  0x28   :  { %p565_p3 = scmp.lt.u32.totalorder %s561_s14, %s772_s4 }
  0x2a   :  { %p567_p4 = pnand %p565_p3, %p562_p2 }
  0x2c   :  { %570 = shalt.err (!%p567_p4)
}
  0x2d   :  { %s571_s20 = scalar_lea.vmem %s52_s11, 512  ;;  %p576_p6 = scmp.lt.s32.totalorder %s52_s11, %s52_s11 }
  0x2e   :  { %p572_p5 = scmp.ne.s32.totalorder %s52_s11, %s571_s20  ;;  %p577_p7 = scmp.lt.s32.totalorder %s571_s20, %s571_s20 }
  0x30   :  { %p578_p8 = por %p577_p7, %p576_p6 }
  0x32   :  { %p579_p9 = pnand %p578_p8, %p572_p5 }
  0x34   :  { %582 = shalt.err (!%p579_p9)
}
  0x35   :  { %57 = dma.hbm_to_vmem [thread:$0]  %s772_s4, 512, %s52_s11, [#allocation7], %s613_s18, %s613_s18, %s614_s19  }
  0x36   :  { %605 = dma.done.wait [#allocation4], 256  }
  0x37   :  { %606 = vsyncadd [#allocation4], 4294967040 }
  0x38   :  { %607 = dma.done.wait [#allocation7], 1024  }
  0x39   :  { %608 = vsyncadd [#allocation7], 4294966272  ;;  %v616_v1 = vmov 0.0|0.0   ;;  %vm617_vm0 = vmmov 0   ;;  %v618_v2 = vmov 0.0   ;;  %v187_v3 = vlaneseq  ;;  %v170_v8 = vld [vmem:[#allocation6] sm:$0xff] }
  0x3a   :  { %488 = vmatprep.subr.bf16.mxu1 %v616_v1  ;;  %477 = vmatprep.mubr.msk.f32.mxu1 %vm617_vm0, %v618_v2  ;;  %v619_v4 = vmov 1966171168   ;;  %v171_v9 = vld [vmem:[#allocation6 + $0x8] sm:$0xff]  ;;  %v75_v10 = vld [vmem:[#allocation8] sm:$0xff]  ;;  %v172_v13 = vld [vmem:[#allocation6 + $0x10] sm:$0xff]  ;;  %vm86_vm1 = vcmask 261120  }
  0x3b   :  { %v185_v5 = vunpack.c.l.s4 %v619_v4  ;;  %v723_v7 = vshrl.u32 %v187_v3, 7  ;;  %v489_v11 = vpack.c.bf16 %v171_v9, %v170_v8  ;;  %v76_v12 = vld [vmem:[#allocation8 + $0x8] sm:$0xff]  ;;  %v173_v14 = vld [vmem:[#allocation6 + $0x18] sm:$0xff]  ;;  %v77_v16 = vld [vmem:[#allocation8 + $0x10] sm:$0xff]  ;;  %v620_v29 = vmov 0  }
  0x3c   :  { %v480_v15 = vpack.c.bf16 %v76_v12, %v75_v10  ;;  %v78_v17 = vld [vmem:[#allocation8 + $0x18] sm:$0xff]  ;;  %v168_v18 = vld [vmem:[%s768_s0] sm:$0x1]  ;;  %v492_v20 = vpack.c.bf16 %v173_v14, %v172_v13  ;;  %v169_v22 = vld [vmem:[%s768_s0 + $0x1] sm:$0x1]  ;;  %505 = vset.pattern.permute.xlu1 %v620_v29  ;;  %506 = vset.pattern.permute.xlu0 %v620_v29  ;;  %v337_v55 = vand.u32 127, %v187_v3 }
  0x3d   :  { %v186_v6 = vunpack.c.0.s8 %v185_v5  ;;  %490 = vmatpush3.bf16.msra.mxu1 %v489_v11  ;;  %v484_v21 = vpack.c.bf16 %v78_v17, %v77_v16  ;;  %v73_v23 = vld [vmem:[#allocation3] sm:$0xff]  ;;  %v183_v24 = vcombine.low %v168_v18, %v169_v22  ;;  %v74_v27 = vld [vmem:[#allocation3 + $0x8] sm:$0xff]  ;;  %v446_v28 = vld [vmem:[#allocation2] ss:$0 sm:$0xff]  ;;  %v295_v37 = vsub.s32 0, %v723_v7 }
  0x3e   :  { %481 = vmatprep.subr.bf16.mxu0 %v480_v15  ;;  %491 = vmatprep.subr.bf16.mxu1 %v616_v1  ;;  %v443_v30 = vld [vmem:[%s771_s3] ss:$0 sm:$0xff]  ;;  %v340_v58 = vsub.s32 %v337_v55, %v723_v7  ;;  %vm346_vm2 = vcmask 1041409   ;;  %vm349_vm3 = vcmask 58368   ;;  %v360_v2 = vsub.s32 1, %v723_v7 }
  0x3f   :  { %v189_v19 = vsub.s32 %v186_v6, %v723_v7  ;;  %483 = vmatpush3.bf16.msra.mxu0 %v480_v15  ;;  %466 = vmatprep.mubr.msk.f32.mxu0 %vm86_vm1, %v73_v23  ;;  %v440_v35 = vld [vmem:[%s773_s5] ss:$0 sm:$0xff]  ;;  %s621_s5 = smov [#allocation9]  }
  0x40   :  { %485 = vmatprep.subr.bf16.mxu0 %v484_v21  ;;  %329 = vperm.xlu1 %505, %v446_v28   ;;  %v445_v48 = vld [vmem:[%s774_s6] ss:$0 sm:$0xff]  ;;  %s430_s6 = sshll.u32 %s621_s5, 4  ;;  %s431_s6 = int_to_ptr.vmem [resolvable:$true] %s430_s6 }
  0x41   :  { %v190_v25 = vrot.slane %v183_v24, %v189_v19  ;;  %493 = vmatpush3.bf16.msra.mxu1 %v492_v20  ;;  %s583_s26 = scalar_lea.vmem %s431_s6, 32  ;;  %p588_p11 = scmp.lt.s32.totalorder %s431_s6, %s431_s6 }
  0x42   :  { %p584_p10 = scmp.ne.s32.totalorder %s431_s6, %s583_s26  ;;  %p589_p12 = scmp.lt.s32.totalorder %s583_s26, %s583_s26 }
  0x43   :  { %v197_v26 = vrot.slane %v190_v25, %v189_v19  ;;  %487 = vmatpush3.bf16.msra.mxu0 %v484_v21 }
  0x44   :  { %p590_p13 = por %p589_p12, %p588_p11 }
  0x45   :  { %478 = vmatmul.mubr.msk.f32.vlgmr.msra.gmra.mrb[0].mxu1 %vm86_vm1, %v197_v26 }
  0x46   :  { %467 = vmatmul.mubr.msk.f32.vlgmr.msra.gmra.mrb[0].mxu0 %vm86_vm1, %v74_v27  ;;  %p591_p0 = pnand %p590_p13, %p584_p10 }
  0xbf   :  { %v330_v56 = vpop.permute.xlu1 %329 }
 0x118   :  { %v266_v31 = vpop.f32.mrb[0].mxu1 }
 0x119   :  { %v267_v32 = vadd.f32 %v443_v30, %v266_v31  ;;  %v479_v33 = vpop.f32.mrb[1].mxu1  ;;  %v468_v34 = vpop.f32.mrb[0].mxu0 }
 0x11a   :  { %v159_v38 = vpop.f32.mrb[1].mxu0  ;;  %v165_v44 = vadd.f32 %v468_v34, %v440_v35 }
 0x11b   :  { %v277_v36 = vrot.slane %v267_v32, %v189_v19  ;;  %v160_v41 = vadd.f32 %v440_v35, %v159_v38 }
 0x11d   :  { %v278_v39 = vcombine.high %v277_v36, %v277_v36  ;;  %v285_v40 = vrot.slane %v277_v36, %v189_v19 }
 0x11f   :  { %v292_v42 = vrot.slane %v278_v39, %v189_v19  ;;  %v296_v43 = vrot.slane %v285_v40, %v295_v37 }
 0x121   :  { %v300_v45 = vrot.slane %v292_v42, %v295_v37  ;;  %v303_v46 = vadd.f32 %v296_v43, %v160_v41 }
 0x123   :  { %v304_v47 = vadd.f32 %v300_v45, %v165_v44  ;;  %507 = vtanh.f32 %v303_v46 }
 0x125   :  { %509 = vtanh.f32 %v304_v47 }
 0x12d   :  { %v508_v49 = vpop.eup %507 }
 0x12e   :  { %v314_v50 = vmul.f32 %v508_v49, %v445_v48 }
 0x12f   :  { %v510_v51 = vpop.eup %509 }
 0x130   :  { %v316_v52 = vsel %vm86_vm1, %v314_v50, 0.0  ;;  %v315_v53 = vmul.f32 %v510_v51, %v445_v48 }
 0x131   :  { %317 = vadd.xlane.f32.xlu0 %v316_v52 }
 0x132   :  { %v319_v54 = vsel %vm86_vm1, %v315_v53, 0.0 }
 0x135   :  { %320 = vadd.xlane.f32.xlu0 %v319_v54 }
 0x1be   :  { %v318_v57 = vpop.xlane.xlu0 %317 }
 0x1bf   :  { %v332_v59 = vadd.f32 %v330_v56, %v318_v57 }
 0x1c1   :  { %v341_v62 = vrot.slane %v332_v59, %v340_v58 }
 0x1c2   :  { %v321_v60 = vpop.xlane.xlu0 %320 }
 0x1c3   :  { %v333_v61 = vadd.f32 %v330_v56, %v321_v60 }
 0x1c5   :  { %v345_v63 = vrot.slane %v333_v61, %v340_v58 }
 0x1c7   :  { %v347_v0 = vsel %vm346_vm2, %v345_v63, %v341_v62 }
 0x1c8   :  { %v350_v1 = vsel %vm349_vm3, %v347_v0, -inf }
 0x1c9   :  { %351 = vmax.xlane.f32.xlu1 %v350_v1 }
 0x256   :  { %v352_v4 = vpop.xlane.xlu1 %351 }
 0x257   :  { %v357_v3 = vrot.slane %v352_v4, %v295_v37  ;;  %v361_v5 = vrot.slane %v352_v4, %v360_v2 }
 0x259   :  { %v364_v6 = vsub.f32 %v332_v59, %v357_v3  ;;  %v365_v8 = vsub.f32 %v333_v61, %v361_v5 }
 0x25b   :  { %v366_v9 = vmul.f32 1.442695, %v364_v6  ;;  %v368_v10 = vmul.f32 1.442695, %v365_v8 }
 0x25d   :  { %511 = vpow2.f32 %v366_v9 }
 0x25e   :  { %513 = vpow2.f32 %v368_v10 }
 0x267   :  { %v512_v11 = vpop.eup %511 }
 0x268   :  { %v514_v12 = vpop.eup %513  ;;  %373 = vperm.xlu0 %506, %v512_v11  }
 0x269   :  { %376 = vperm.xlu1 %505, %v514_v12  }
 0x2e7   :  { %v374_v13 = vpop.permute.xlu0 %373 }
 0x2e8   :  { %v377_v14 = vpop.permute.xlu1 %376  ;;  %v381_v15 = vrot.slane %v374_v13, %v340_v58 }
 0x2e9   :  { %v385_v16 = vrot.slane %v377_v14, %v340_v58 }
 0x2eb   :  { %v386_v17 = vsel %vm346_vm2, %v385_v16, %v381_v15 }
 0x2ec   :  { %v388_v7 = vsel %vm349_vm3, %v386_v17, 0.0 }
 0x2ed   :  { %389 = vadd.xlane.f32.xlu0 %v388_v7 }
 0x37a   :  { %v390_v18 = vpop.xlane.xlu0 %389 }
 0x37b   :  { %515 = vrcp.f32 %v390_v18 }
 0x385   :  { %v516_v19 = vpop.eup %515 }
 0x386   :  { %v396_v20 = vrot.slane %v516_v19, %v295_v37  ;;  %v400_v22 = vrot.slane %v516_v19, %v360_v2 }
 0x388   :  { %v403_v21 = vmul.f32 %v512_v11, %v396_v20  ;;  %v404_v23 = vmul.f32 %v514_v12, %v400_v22 }
 0x38a   :  { %408 = vperm.xlu1 %505, %v403_v21  }
 0x38e   :  { %411 = vperm.xlu1 %505, %v404_v23  }
 0x409   :  { %v409_v24 = vpop.permute.xlu1 %408 }
 0x40a   :  { %v416_v26 = vrot.slane %v409_v24, %v340_v58 }
 0x40d   :  { %v412_v25 = vpop.permute.xlu1 %411 }
 0x40e   :  { %v420_v27 = vrot.slane %v412_v25, %v340_v58 }
 0x410   :  { %v421_v28 = vsel %vm346_vm2, %v420_v27, %v416_v26 }
 0x411   :  { %423 = vst.msk [vmem:[#allocation9] sm:$0x3] %vm349_vm3, %v421_v28 }
 0x412   :  { %594 = shalt.err (!%p591_p0)
}
 0x413   :  { %s595_s29 = scalar_lea.hbm %s776_s8, 32 }
 0x414   :  { %p596_p1 = scmp.ne.s32.totalorder %s776_s8, %s595_s29  ;;  %p599_p2 = scmp.lt.u32.totalorder %s595_s29, %s776_s8 }
 0x416   :  { %p601_p3 = pnand %p599_p2, %p596_p1 }
 0x418   :  { %604 = shalt.err (!%p601_p3)
}
 0x419   :  { %433 = dma.vmem_to_hbm [thread:$0]  %s431_s6, 32, %s776_s8, [#allocation5]  }
 0x41a   :  { %609 = dma.done.wait [#allocation5], 32  }
 0x41b   :  { %610 = vsyncadd [#allocation5], 4294967264 }
 0x41c   :  { %437 = vsyncpa [#allocation4], 1 }
 0x41d   :  { %438 = vsyncpa [#allocation7], 1 }
 0x41e   :  { %439 = vsyncpa [#allocation5], 1 }

</bundles_post_ra>
